<compile_context>
chip_gen: v7x
topology: tpu7x:2x2x1
jax: 0.10.0
libtpu: 0.0.40
codegen_flags: <defaults>
</compile_context>

<pallas_src>
import math

import jax
import jax.numpy as jnp
from jax.experimental import pallas as pl
from jax.experimental.pallas import tpu as pltpu

LN_EPS = 1e-5                     # torch.nn.LayerNorm default
INV_SQRT2 = 1.0 / math.sqrt(2.0)
_TANH_C0 = math.sqrt(2.0 / math.pi)
_TANH_C1 = 0.044715


# --------------------------------------------------------------------------
# Kernel
# --------------------------------------------------------------------------
def _make_adapter_kernel(gelu: str):
    """Fused Linear -> LayerNorm -> GELU -> Linear -> LayerNorm."""

    def kernel(x_ref, w1_ref, w2_ref, p_ref, o_ref):
        d = o_ref.shape[-1]
        inv_d = 1.0 / float(d)

        # Packed 1-D params: rows = [b1, g1, be1, b2, g2, be2, pad, pad].
        p = p_ref[...]
        b1, g1, be1 = p[0:1], p[1:2], p[2:3]
        b2, g2, be2 = p[3:4], p[4:5], p[5:6]

        # ---- Linear1: in-kernel bf16 cast (MXU native), f32 accumulate ----
        x = x_ref[...].astype(jnp.bfloat16)
        h = jnp.dot(x, w1_ref[...], preferred_element_type=jnp.float32) + b1

        # ---- LayerNorm1 (mean-shifted variance, f32) ----
        mu1 = jnp.sum(h, axis=-1, keepdims=True) * inv_d
        c1 = h - mu1
        var1 = jnp.sum(c1 * c1, axis=-1, keepdims=True) * inv_d
        h = c1 * jax.lax.rsqrt(var1 + LN_EPS) * g1 + be1

        # ---- GELU ----
        if gelu == "tanh":
            # tanh lowers to the EUP slot (nearly free when VALU binds).
            h = 0.5 * h * (1.0 + jnp.tanh(_TANH_C0 * (h + _TANH_C1 * h * h * h)))
        else:
            # Exact erf form — torch.nn.GELU default.
            h = 0.5 * h * (1.0 + jax.lax.erf(h * INV_SQRT2))

        # ---- Linear2 ----
        y = jnp.dot(h.astype(jnp.bfloat16), w2_ref[...],
                    preferred_element_type=jnp.float32) + b2

        # ---- LayerNorm2 ----
        mu2 = jnp.sum(y, axis=-1, keepdims=True) * inv_d
        c2 = y - mu2
        var2 = jnp.sum(c2 * c2, axis=-1, keepdims=True) * inv_d
        y = c2 * jax.lax.rsqrt(var2 + LN_EPS) * g2 + be2

        o_ref[...] = y.astype(o_ref.dtype)

    return kernel


# --------------------------------------------------------------------------
# Generation-aware configuration
# --------------------------------------------------------------------------
def _tpu_config():
    """Returns (physical_vmem_bytes, tensorcores_sharing_parallel_grid)."""
    vmem = 128 * (1 << 20)
    cores = 1
    try:
        vmem = int(pltpu.get_tpu_info().vmem_capacity_bytes)
    except Exception:
        pass
    try:
        kind = jax.devices()[0].device_kind.lower().replace(" ", "")
    except Exception:
        kind = ""
    if "v7" in kind or "tpu7" in kind:
        cores = 2
    if vmem <= 72 * (1 << 20):        # v7x: 64 MiB VMEM per TC, 2 TCs/chip
        cores = max(cores, 2)
    return vmem, cores


def _choose_tile_rows(rows, c_in, d, out_bytes, num_cores, vmem_budget):
    """Largest 16-aligned row tile fitting the budget; even grid on dual-TC."""
    # Bytes scaling with the row tile: double-buffered f32 x tile,
    # double-buffered out tile, ~6 f32 intermediates live during compute.
    per_row = 2 * c_in * 4 + 2 * d * out_bytes + 6 * d * 4
    resident = (c_in * d + d * d) * 2 + 8 * d * 4 + (2 << 20)   # bf16 weights + slack
    max_tile = (vmem_budget - resident) // per_row
    max_tile = max(16, (max_tile // 16) * 16)
    max_tile = min(max_tile, 1024)          # diminishing returns past ~1024 rows

    steps = max(num_cores, -(-rows // max_tile))
    if num_cores > 1 and steps % num_cores:
        steps += num_cores - (steps % num_cores)   # even split across TensorCores
    tile = ((-(-rows // steps) + 15) // 16) * 16
    return max(16, min(tile, max_tile))


# --------------------------------------------------------------------------
# Wrapper
# --------------------------------------------------------------------------
def image_adapter_pallas(x, params, *, tile_rows=None,
                         out_dtype=jnp.bfloat16, gelu="erf"):
    """x: [B, P, C_clip] float32 -> [B, P, D] (default bf16)."""
    B, P, Cc = x.shape
    D = params["w1"].shape[1]
    rows = B * P
    out_bytes = jnp.dtype(out_dtype).itemsize

    vmem_cap, num_cores = _tpu_config()
    vmem_budget = int(vmem_cap * 0.75)      # ~96 MiB on v5e/v6e, ~48 MiB on v7x

    if tile_rows is None:
        tile_rows = _choose_tile_rows(rows, Cc, D, out_bytes, num_cores, vmem_budget)
    tile_rows = max(16, (tile_rows // 16) * 16)

    grid = pl.cdiv(rows, tile_rows)
    rows_p = grid * tile_rows

    # x stays f32 (cast to bf16 inside the kernel); pad only if needed.
    xf = x.reshape(rows, Cc)
    if rows_p != rows:
        xf = jnp.pad(xf, ((0, rows_p - rows), (0, 0)))

    # Weights cast once (tiny, resident).
    w1 = params["w1"].astype(jnp.bfloat16)
    w2 = params["w2"].astype(jnp.bfloat16)

    # Six (D,) params packed into a single resident (8, D) f32 block.
    packed = jnp.concatenate(
        [params["b1"].reshape(1, D), params["g1"].reshape(1, D),
         params["be1"].reshape(1, D), params["b2"].reshape(1, D),
         params["g2"].reshape(1, D), params["be2"].reshape(1, D),
         jnp.zeros((2, D), jnp.float32)], axis=0).astype(jnp.float32)

    resident = dict(pipeline_mode=pl.Buffered(1))   # constant index_map -> 1 buffer

    est = (2 * tile_rows * Cc * 4            # x tiles (f32, double-buffered)
           + 2 * tile_rows * D * out_bytes   # out tiles (double-buffered)
           + (Cc * D + D * D) * 2            # bf16 weights (single-buffered)
           + 8 * D * 4                       # packed params
           + 6 * tile_rows * D * 4)          # f32 intermediates
    vmem_limit = int(min(vmem_budget, max(32 * (1 << 20), 2 * est)))

    out = pl.pallas_call(
        _make_adapter_kernel(gelu),
        out_shape=jax.ShapeDtypeStruct((rows_p, D), out_dtype),
        grid=(grid,),
        in_specs=[
            pl.BlockSpec((tile_rows, Cc), lambda i: (i, 0)),        # x tile (f32)
            pl.BlockSpec((Cc, D), lambda i: (0, 0), **resident),    # w1 (bf16)
            pl.BlockSpec((D, D), lambda i: (0, 0), **resident),     # w2 (bf16)
            pl.BlockSpec((8, D), lambda i: (0, 0), **resident),     # packed params
        ],
        out_specs=pl.BlockSpec((tile_rows, D), lambda i: (i, 0)),   # lane-dense, full-D
        compiler_params=pltpu.CompilerParams(
            dimension_semantics=("parallel",),
            vmem_limit_bytes=vmem_limit),
    )(xf, w1, w2, packed)

    return out[:rows].reshape(B, P, D)


def init_adapter_params(key, c_clip, d):
    ks = jax.random.split(key, 4)
    s1 = 1.0 / math.sqrt(c_clip)
    s2 = 1.0 / math.sqrt(d)
    return {
        "w1": jax.random.uniform(ks[0], (c_clip, d), jnp.float32, -s1, s1),
        "b1": jax.random.uniform(ks[1], (d,), jnp.float32, -s1, s1),
        "g1": jnp.ones((d,), jnp.float32),
        "be1": jnp.zeros((d,), jnp.float32),
        "w2": jax.random.uniform(ks[2], (d, d), jnp.float32, -s2, s2),
        "b2": jax.random.uniform(ks[3], (d,), jnp.float32, -s2, s2),
        "g2": jnp.ones((d,), jnp.float32),
        "be2": jnp.zeros((d,), jnp.float32),
    }


def vision_language_encoder_forward(image_patch_embeddings, tokens,
                                    adapter_params, emb_table, sos_id, eos_id):
    """Mirrors VisionLanguageEncoder.forward (pretrained towers mocked).

    image_patch_embeddings: [B, P, C_clip]  (CLIP patches, CLS already dropped)
    tokens:                 [B, L] int32    (padded caption token ids)
    Returns (final_input [B, P+L+1, D], target_padded [B, L+1], num_patches).
    """
    B, L = tokens.shape

    # Adapter — the Pallas hot path.
    adapted = image_adapter_pallas(image_patch_embeddings, adapter_params)

    # sos / eos shifting — plain JAX glue.
    sos = jnp.full((B, 1), sos_id, dtype=tokens.dtype)
    eos = jnp.full((B, 1), eos_id, dtype=tokens.dtype)
    input_padded = jnp.concatenate([sos, tokens], axis=1)        # [B, L+1]
    target_padded = jnp.concatenate([tokens, eos], axis=1)       # [B, L+1]

    # TODO(synk): the real Qwen embedding table / tokenizer are pretrained; a
    # synthetic deterministic table is used for the gather below.
    input_embeddings = jnp.take(emb_table, input_padded, axis=0)  # [B, L+1, D]

    num_patches = adapted.shape[1]
    final_input = jnp.concatenate(
        [adapted, input_embeddings.astype(adapted.dtype)], axis=1)
    return final_input, target_padded, num_patches


if __name__ == "__main__":
    key = jax.random.PRNGKey(0)
    k_img, k_par, k_emb, k_tok = jax.random.split(key, 4)

    # Small shapes consistent with the forward: B images, P patches,
    # CLIP width 768 (as in the module), mock Qwen hidden D, L tokens, V vocab.
    B, P, C_CLIP, D, L, V = 2, 16, 768, 128, 6, 64
    SOS_ID, EOS_ID = 1, 2

    image_patch_embeddings = jax.random.normal(k_img, (B, P, C_CLIP), jnp.float32)
    adapter_params = init_adapter_params(k_par, C_CLIP, D)
    emb_table = jax.random.normal(k_emb, (V, D), jnp.float32) * 0.02
    tokens = jax.random.randint(k_tok, (B, L), 3, V, dtype=jnp.int32)

    final_input, target_padded, num_patches = vision_language_encoder_forward(
        image_patch_embeddings, tokens, adapter_params, emb_table, SOS_ID, EOS_ID)
    jax.block_until_ready((final_input, target_padded))

    # References: (a) bf16-matmul reference (matches kernel precision),
    #             (b) pure-f32 reference (semantic sanity, loose tolerance).
    def ref_adapter(x, p, bf16_matmul):
        def mm(a, w):
            if bf16_matmul:
                a = a.astype(jnp.bfloat16)
                w = w.astype(jnp.bfloat16)
            return jnp.dot(a, w, preferred_element_type=jnp.float32)
        h = mm(x, p["w1"]) + p["b1"]
        mu = h.mean(-1, keepdims=True)
        var = ((h - mu) ** 2).mean(-1, keepdims=True)
        h = (h - mu) * jax.lax.rsqrt(var + LN_EPS) * p["g1"] + p["be1"]
        h = 0.5 * h * (1.0 + jax.lax.erf(h * INV_SQRT2))
        y = mm(h, p["w2"]) + p["b2"]
        mu2 = y.mean(-1, keepdims=True)
        var2 = ((y - mu2) ** 2).mean(-1, keepdims=True)
        return (y - mu2) * jax.lax.rsqrt(var2 + LN_EPS) * p["g2"] + p["be2"]

    got = final_input[:, :num_patches, :].astype(jnp.float32)
    assert final_input.shape == (B, P + L + 1, D)
    assert target_padded.shape == (B, L + 1)
    assert num_patches == P

    ref_bf16 = ref_adapter(image_patch_embeddings, adapter_params, True)
    ref_f32 = ref_adapter(image_patch_embeddings, adapter_params, False)
    err_bf16 = float(jnp.max(jnp.abs(got - ref_bf16)))
    err_f32 = float(jnp.max(jnp.abs(got - ref_f32)))
    # Tolerances account for the bf16 output cast (~0.4% relative).
    assert jnp.allclose(got, ref_bf16, atol=3e-2, rtol=3e-2), err_bf16
    assert jnp.allclose(got, ref_f32, atol=2e-1, rtol=2e-1), err_f32

    print("KERNEL_OK")
</pallas_src>

<mosaic_0001>
module attributes {stable_mosaic.version = 11 : i64} {
  func.func @kernel(%arg0: i32, %arg1: memref<32x768xf32, #tpu.memory_space<vmem>>, %arg2: memref<768x128xbf16, #tpu.memory_space<vmem>>, %arg3: memref<128x128xbf16, #tpu.memory_space<vmem>>, %arg4: memref<8x128xf32, #tpu.memory_space<vmem>>, %arg5: memref<32x128xbf16, #tpu.memory_space<vmem>>) attributes {dimension_semantics = [#tpu.dimension_semantics<parallel>], iteration_bounds = array<i64: 1>, scalar_prefetch = 0 : i64, scratch_operands = 0 : i64, tpu.core_type = #tpu.core_type<tc>, window_params = [{transform_indices = @transform_0, window_bounds = array<i64: 32, 768>}, {pipeline_mode = #tpu.pipeline_mode<synchronous>, transform_indices = @transform_1, window_bounds = array<i64: 768, 128>}, {pipeline_mode = #tpu.pipeline_mode<synchronous>, transform_indices = @transform_2, window_bounds = array<i64: 128, 128>}, {pipeline_mode = #tpu.pipeline_mode<synchronous>, transform_indices = @transform_3, window_bounds = array<i64: 8, 128>}, {transform_indices = @transform_4, window_bounds = array<i64: 32, 128>}]} {
    %c0 = arith.constant 0 : index
    %c0_0 = arith.constant 0 : index
    %0 = vector.load %arg4[%c0, %c0_0] : memref<8x128xf32, #tpu.memory_space<vmem>>, vector<8x128xf32>
    %1 = vector.extract_strided_slice %0 {offsets = [0, 0], sizes = [1, 128], strides = [1, 1]} : vector<8x128xf32> to vector<1x128xf32>
    %2 = vector.extract_strided_slice %0 {offsets = [1, 0], sizes = [1, 128], strides = [1, 1]} : vector<8x128xf32> to vector<1x128xf32>
    %3 = vector.extract_strided_slice %0 {offsets = [2, 0], sizes = [1, 128], strides = [1, 1]} : vector<8x128xf32> to vector<1x128xf32>
    %4 = vector.extract_strided_slice %0 {offsets = [3, 0], sizes = [1, 128], strides = [1, 1]} : vector<8x128xf32> to vector<1x128xf32>
    %5 = vector.extract_strided_slice %0 {offsets = [4, 0], sizes = [1, 128], strides = [1, 1]} : vector<8x128xf32> to vector<1x128xf32>
    %6 = vector.extract_strided_slice %0 {offsets = [5, 0], sizes = [1, 128], strides = [1, 1]} : vector<8x128xf32> to vector<1x128xf32>
    %c0_1 = arith.constant 0 : index
    %c0_2 = arith.constant 0 : index
    %7 = vector.load %arg1[%c0_1, %c0_2] : memref<32x768xf32, #tpu.memory_space<vmem>>, vector<32x768xf32>
    %8 = arith.truncf %7 : vector<32x768xf32> to vector<32x768xbf16>
    %c0_3 = arith.constant 0 : index
    %c0_4 = arith.constant 0 : index
    %9 = vector.load %arg2[%c0_3, %c0_4] : memref<768x128xbf16, #tpu.memory_space<vmem>>, vector<768x128xbf16>
    %cst = arith.constant dense<0.000000e+00> : vector<32x128xf32>
    %10 = tpu.matmul %8, %9, %cst {dimension_numbers = #tpu.dot_dimension_numbers<[1], [0], [0], [1], [0, 0, 1, 1], [], []>} : vector<32x768xbf16>, vector<768x128xbf16>, vector<32x128xf32> -> vector<32x128xf32>
    %11 = vector.broadcast %1 : vector<1x128xf32> to vector<32x128xf32>
    %12 = arith.addf %10, %11 : vector<32x128xf32>
    %cst_5 = arith.constant dense<0.000000e+00> : vector<32xf32>
    %13 = vector.multi_reduction <add>, %12, %cst_5 [1] : vector<32x128xf32> to vector<32xf32>
    %14 = vector.shape_cast %13 : vector<32xf32> to vector<32x1xf32>
    %cst_6 = arith.constant 7.812500e-03 : f32
    %15 = vector.broadcast %cst_6 : f32 to vector<32x1xf32>
    %16 = arith.mulf %14, %15 : vector<32x1xf32>
    %17 = vector.broadcast %16 : vector<32x1xf32> to vector<32x128xf32>
    %18 = arith.subf %12, %17 : vector<32x128xf32>
    %19 = arith.mulf %18, %18 : vector<32x128xf32>
    %cst_7 = arith.constant dense<0.000000e+00> : vector<32xf32>
    %20 = vector.multi_reduction <add>, %19, %cst_7 [1] : vector<32x128xf32> to vector<32xf32>
    %21 = vector.shape_cast %20 : vector<32xf32> to vector<32x1xf32>
    %cst_8 = arith.constant 7.812500e-03 : f32
    %22 = vector.broadcast %cst_8 : f32 to vector<32x1xf32>
    %23 = arith.mulf %21, %22 : vector<32x1xf32>
    %cst_9 = arith.constant 9.99999974E-6 : f32
    %24 = vector.broadcast %cst_9 : f32 to vector<32x1xf32>
    %25 = arith.addf %23, %24 : vector<32x1xf32>
    %26 = math.rsqrt %25 : vector<32x1xf32>
    %27 = vector.broadcast %26 : vector<32x1xf32> to vector<32x128xf32>
    %28 = arith.mulf %18, %27 : vector<32x128xf32>
    %29 = vector.broadcast %2 : vector<1x128xf32> to vector<32x128xf32>
    %30 = arith.mulf %28, %29 : vector<32x128xf32>
    %31 = vector.broadcast %3 : vector<1x128xf32> to vector<32x128xf32>
    %32 = arith.addf %30, %31 : vector<32x128xf32>
    %cst_10 = arith.constant 5.000000e-01 : f32
    %33 = vector.broadcast %cst_10 : f32 to vector<32x128xf32>
    %34 = arith.mulf %33, %32 : vector<32x128xf32>
    %cst_11 = arith.constant 0.707106769 : f32
    %35 = vector.broadcast %cst_11 : f32 to vector<32x128xf32>
    %36 = arith.mulf %32, %35 : vector<32x128xf32>
    %37 = math.erf %36 : vector<32x128xf32>
    %cst_12 = arith.constant 1.000000e+00 : f32
    %38 = vector.broadcast %cst_12 : f32 to vector<32x128xf32>
    %39 = arith.addf %38, %37 : vector<32x128xf32>
    %40 = arith.mulf %34, %39 : vector<32x128xf32>
    %41 = arith.truncf %40 : vector<32x128xf32> to vector<32x128xbf16>
    %c0_13 = arith.constant 0 : index
    %c0_14 = arith.constant 0 : index
    %42 = vector.load %arg3[%c0_13, %c0_14] : memref<128x128xbf16, #tpu.memory_space<vmem>>, vector<128x128xbf16>
    %cst_15 = arith.constant dense<0.000000e+00> : vector<32x128xf32>
    %43 = tpu.matmul %41, %42, %cst_15 {dimension_numbers = #tpu.dot_dimension_numbers<[1], [0], [0], [1], [0, 0, 1, 1], [], []>} : vector<32x128xbf16>, vector<128x128xbf16>, vector<32x128xf32> -> vector<32x128xf32>
    %44 = vector.broadcast %4 : vector<1x128xf32> to vector<32x128xf32>
    %45 = arith.addf %43, %44 : vector<32x128xf32>
    %cst_16 = arith.constant dense<0.000000e+00> : vector<32xf32>
    %46 = vector.multi_reduction <add>, %45, %cst_16 [1] : vector<32x128xf32> to vector<32xf32>
    %47 = vector.shape_cast %46 : vector<32xf32> to vector<32x1xf32>
    %cst_17 = arith.constant 7.812500e-03 : f32
    %48 = vector.broadcast %cst_17 : f32 to vector<32x1xf32>
    %49 = arith.mulf %47, %48 : vector<32x1xf32>
    %50 = vector.broadcast %49 : vector<32x1xf32> to vector<32x128xf32>
    %51 = arith.subf %45, %50 : vector<32x128xf32>
    %52 = arith.mulf %51, %51 : vector<32x128xf32>
    %cst_18 = arith.constant dense<0.000000e+00> : vector<32xf32>
    %53 = vector.multi_reduction <add>, %52, %cst_18 [1] : vector<32x128xf32> to vector<32xf32>
    %54 = vector.shape_cast %53 : vector<32xf32> to vector<32x1xf32>
    %cst_19 = arith.constant 7.812500e-03 : f32
    %55 = vector.broadcast %cst_19 : f32 to vector<32x1xf32>
    %56 = arith.mulf %54, %55 : vector<32x1xf32>
    %cst_20 = arith.constant 9.99999974E-6 : f32
    %57 = vector.broadcast %cst_20 : f32 to vector<32x1xf32>
    %58 = arith.addf %56, %57 : vector<32x1xf32>
    %59 = math.rsqrt %58 : vector<32x1xf32>
    %60 = vector.broadcast %59 : vector<32x1xf32> to vector<32x128xf32>
    %61 = arith.mulf %51, %60 : vector<32x128xf32>
    %62 = vector.broadcast %5 : vector<1x128xf32> to vector<32x128xf32>
    %63 = arith.mulf %61, %62 : vector<32x128xf32>
    %64 = vector.broadcast %6 : vector<1x128xf32> to vector<32x128xf32>
    %65 = arith.addf %63, %64 : vector<32x128xf32>
    %66 = arith.truncf %65 : vector<32x128xf32> to vector<32x128xbf16>
    %c0_21 = arith.constant 0 : index
    %c0_22 = arith.constant 0 : index
    %67 = vector.load %arg5[%c0_21, %c0_22] : memref<32x128xbf16, #tpu.memory_space<vmem>>, vector<32x128xbf16>
    tpu.vector_store %arg5[%c0_21, %c0_22], %66 {strides = array<i32>} : memref<32x128xbf16, #tpu.memory_space<vmem>>, vector<32x128xbf16>,
    return
  }
  func.func @transform_0(%arg0: i32) -> (i32, i32) {
    %c0_i32 = arith.constant 0 : i32
    %c0_i32_0 = arith.constant 0 : i32
    return %arg0, %c0_i32 : i32, i32
  }
  func.func @transform_1(%arg0: i32) -> (i32, i32) {
    %c0_i32 = arith.constant 0 : i32
    %c0_i32_0 = arith.constant 0 : i32
    %c0_i32_1 = arith.constant 0 : i32
    return %c0_i32, %c0_i32_0 : i32, i32
  }
  func.func @transform_2(%arg0: i32) -> (i32, i32) {
    %c0_i32 = arith.constant 0 : i32
    %c0_i32_0 = arith.constant 0 : i32
    %c0_i32_1 = arith.constant 0 : i32
    return %c0_i32, %c0_i32_0 : i32, i32
  }
  func.func @transform_3(%arg0: i32) -> (i32, i32) {
    %c0_i32 = arith.constant 0 : i32
    %c0_i32_0 = arith.constant 0 : i32
    %c0_i32_1 = arith.constant 0 : i32
    return %c0_i32, %c0_i32_0 : i32, i32
  }
  func.func @transform_4(%arg0: i32) -> (i32, i32) {
    %c0_i32 = arith.constant 0 : i32
    %c0_i32_0 = arith.constant 0 : i32
    return %arg0, %c0_i32 : i32, i32
  }
}

</mosaic_0001>

<bundles_post_ra>
// kernel: tpu_custom_call.1
= control target key start
LH: loop header
LB: loop body
LE: loop exit
PB: predicated region body
PF: predicated region fallthrough
CT: control target
= control target key end

     0   :  { %9 = vsyncpa [#allocation3], 0  ;;  %s1414_s0 = inlined_call_operand.hbm [shape: f32[32,768], index: 0, kind: input, shape index: {}]   ;;  %s1415_s1 = inlined_call_operand.hbm [shape: bf16[768,128], index: 1, kind: input, shape index: {}]   ;;  %s1416_s2 = inlined_call_operand.hbm [shape: bf16[128,128], index: 2, kind: input, shape index: {}]   ;;  %s1417_s3 = inlined_call_operand.vmem [shape: f32[8,128], index: 3, kind: input, shape index: {}]   ;;  %s1418_s4 = inlined_call_operand.hbm [shape: bf16[32,128], index: 4, kind: output, shape index: {}]  }
   0x1   :  { %10 = vsyncpa [#allocation6], 0 }
   0x2   :  { %11 = vsyncpa [#allocation4], 0  ;;  %s1300_s15 = smov [#allocation5]   ;;  %s1206_s19 = scalar_lea.hbm %s1415_s1, 6144 }
   0x3   :  { %s29_s16 = sshll.u32 %s1300_s15, 4  ;;  %p1207_p0 = scmp.ne.s32.totalorder %s1415_s1, %s1206_s19  ;;  %s30_s16 = int_to_ptr.vmem [resolvable:$true] %s29_s16 }
   0x4   :  { %p1210_p1 = scmp.lt.u32.totalorder %s1206_s19, %s1415_s1 }
   0x6   :  { %p1212_p2 = pnand %p1210_p1, %p1207_p0 }
   0x8   :  { %1215 = shalt.err (!%p1212_p2)
}
   0x9   :  { %s1216_s24 = scalar_lea.vmem %s30_s16, 6144  ;;  %p1221_p4 = scmp.lt.s32.totalorder %s30_s16, %s30_s16 }
   0xa   :  { %p1217_p3 = scmp.ne.s32.totalorder %s30_s16, %s1216_s24  ;;  %p1222_p5 = scmp.lt.s32.totalorder %s1216_s24, %s1216_s24 }
   0xc   :  { %p1223_p6 = por %p1222_p5, %p1221_p4 }
   0xe   :  { %p1224_p7 = pnand %p1223_p6, %p1217_p3 }
  0x10   :  { %1227 = shalt.err (!%p1224_p7)
}
  0x11   :  { %s1301_s25 = smov 64   ;;  %s1302_s26 = smov 4  }
  0x12   :  { %35 = dma.hbm_to_vmem [thread:$0]  %s1415_s1, 6144, %s30_s16, [#allocation6], %s1301_s25, %s1301_s25, %s1302_s26  }
  0x13   :  { %s1303_s29 = smov [#allocation2]   ;;  %s1228_s7 = scalar_lea.hbm %s1414_s0, 3072 }
  0x14   :  { %s17_s30 = sshll.u32 %s1303_s29, 4  ;;  %p1229_p8 = scmp.ne.s32.totalorder %s1414_s0, %s1228_s7  ;;  %s18_s30 = int_to_ptr.vmem [resolvable:$true] %s17_s30 }
  0x15   :  { %p1232_p9 = scmp.lt.u32.totalorder %s1228_s7, %s1414_s0 }
  0x17   :  { %p1234_p10 = pnand %p1232_p9, %p1229_p8 }
  0x19   :  { %1237 = shalt.err (!%p1234_p10)
}
  0x1a   :  { %s1238_s12 = scalar_lea.vmem %s18_s30, 3072  ;;  %p1243_p12 = scmp.lt.s32.totalorder %s18_s30, %s18_s30 }
  0x1b   :  { %p1239_p11 = scmp.ne.s32.totalorder %s18_s30, %s1238_s12  ;;  %p1244_p13 = scmp.lt.s32.totalorder %s1238_s12, %s1238_s12 }
  0x1d   :  { %p1245_p0 = por %p1244_p13, %p1243_p12 }
  0x1f   :  { %p1246_p1 = pnand %p1245_p0, %p1239_p11 }
  0x21   :  { %1249 = shalt.err (!%p1246_p1)
}
  0x22   :  { %s1304_s1 = smov 768   ;;  %s1305_s13 = smov 48  }
  0x23   :  { %23 = dma.hbm_to_vmem [thread:$0]  %s1414_s0, 3072, %s18_s30, [#allocation3], %s1304_s1, %s1304_s1, %s1305_s13  }
  0x24   :  { %s1306_s16 = smov [#allocation7]   ;;  %s1250_s20 = scalar_lea.hbm %s1416_s2, 1024 }
  0x25   :  { %s41_s17 = sshll.u32 %s1306_s16, 4  ;;  %p1251_p2 = scmp.ne.s32.totalorder %s1416_s2, %s1250_s20  ;;  %s42_s17 = int_to_ptr.vmem [resolvable:$true] %s41_s17 }
  0x26   :  { %p1254_p3 = scmp.lt.u32.totalorder %s1250_s20, %s1416_s2 }
  0x28   :  { %p1256_p4 = pnand %p1254_p3, %p1251_p2 }
  0x2a   :  { %1259 = shalt.err (!%p1256_p4)
}
  0x2b   :  { %s1260_s27 = scalar_lea.vmem %s42_s17, 1024  ;;  %p1265_p6 = scmp.lt.s32.totalorder %s42_s17, %s42_s17 }
  0x2c   :  { %p1261_p5 = scmp.ne.s32.totalorder %s42_s17, %s1260_s27  ;;  %p1266_p7 = scmp.lt.s32.totalorder %s1260_s27, %s1260_s27 }
  0x2e   :  { %p1267_p8 = por %p1266_p7, %p1265_p6 }
  0x30   :  { %p1268_p9 = pnand %p1267_p8, %p1261_p5 }
  0x32   :  { %1271 = shalt.err (!%p1268_p9)
}
  0x33   :  { %47 = dma.hbm_to_vmem [thread:$0]  %s1416_s2, 1024, %s42_s17, [#allocation6], %s1301_s25, %s1301_s25, %s1302_s26  }
  0x34   :  { %1294 = dma.done.wait [#allocation3], 3072  }
  0x35   :  { %1295 = vsyncadd [#allocation3], 4294964224 }
  0x36   :  { %1296 = dma.done.wait [#allocation6], 7168  }
  0x37   :  { %1297 = vsyncadd [#allocation6], 4294960128  ;;  %v1126_v0 = vld [vmem:[#allocation5 + $0x40] sm:$0xff]   ;;  %v1130_v4 = vld [vmem:[#allocation5 + $0x48] sm:$0xff]  }
  0x38   :  { %v1127_v1 = vld [vmem:[#allocation5] sm:$0xff]   ;;  %1004 = vmatprep.subr.bf16.mxu0 %v1126_v0  ;;  %v1131_v5 = vld [vmem:[#allocation5 + $0x8] sm:$0xff]   ;;  %v1134_v8 = vld [vmem:[#allocation5 + $0x50] sm:$0xff]  }
  0x39   :  { %v1128_v2 = vld [vmem:[#allocation5 + $0xc0] sm:$0xff]   ;;  %1005 = vmatpush3.bf16.msra.mxu0 %v1127_v1  ;;  %v1132_v6 = vld [vmem:[#allocation5 + $0xc8] sm:$0xff]   ;;  %v1135_v9 = vld [vmem:[#allocation5 + $0x10] sm:$0xff]  }
  0x3a   :  { %v1129_v3 = vld [vmem:[#allocation5 + $0x80] sm:$0xff]   ;;  %1032 = vmatprep.subr.bf16.mxu1 %v1128_v2  ;;  %1006 = vmatprep.subr.bf16.mxu0 %v1130_v4  ;;  %v1133_v7 = vld [vmem:[#allocation5 + $0x88] sm:$0xff]   ;;  %v1136_v10 = vld [vmem:[#allocation5 + $0xd0] sm:$0xff]  }
  0x3b   :  { %1033 = vmatpush3.bf16.msra.mxu1 %v1129_v3  ;;  %v1137_v11 = vld [vmem:[#allocation5 + $0x90] sm:$0xff]   ;;  %v1138_v12 = vld [vmem:[#allocation5 + $0x58] sm:$0xff]   ;;  %v1142_v16 = vld [vmem:[#allocation5 + $0x60] sm:$0xff]  }
  0x3c   :  { %1034 = vmatprep.subr.bf16.mxu1 %v1132_v6  ;;  %v1139_v13 = vld [vmem:[#allocation5 + $0x18] sm:$0xff]   ;;  %v1143_v17 = vld [vmem:[#allocation5 + $0x20] sm:$0xff]   ;;  %v1146_v20 = vld [vmem:[#allocation5 + $0x68] sm:$0xff]  }
  0x3d   :  { %1007 = vmatpush3.bf16.msra.mxu0 %v1131_v5  ;;  %v1140_v14 = vld [vmem:[#allocation5 + $0xd8] sm:$0xff]   ;;  %v1144_v18 = vld [vmem:[#allocation5 + $0xe0] sm:$0xff]   ;;  %v1147_v21 = vld [vmem:[#allocation5 + $0x28] sm:$0xff]  }
  0x3e   :  { %1008 = vmatprep.subr.bf16.mxu0 %v1134_v8  ;;  %v1141_v15 = vld [vmem:[#allocation5 + $0x98] sm:$0xff]   ;;  %v1145_v19 = vld [vmem:[#allocation5 + $0xa0] sm:$0xff]   ;;  %v1148_v22 = vld [vmem:[#allocation5 + $0xe8] sm:$0xff]  }
  0x3f   :  { %1035 = vmatpush3.bf16.msra.mxu1 %v1133_v7  ;;  %v1149_v23 = vld [vmem:[#allocation5 + $0xa8] sm:$0xff]   ;;  %v1150_v24 = vld [vmem:[#allocation5 + $0x70] sm:$0xff]   ;;  %v1154_v28 = vld [vmem:[#allocation5 + $0x78] sm:$0xff]  }
  0x40   :  { %1036 = vmatprep.subr.bf16.mxu1 %v1136_v10  ;;  %v1151_v25 = vld [vmem:[#allocation5 + $0x30] sm:$0xff]   ;;  %v1155_v29 = vld [vmem:[#allocation5 + $0x38] sm:$0xff]   ;;  %v62_v31 = vld [vmem:[#allocation2 + $0x8] sm:$0xff] }
  0x41   :  { %1009 = vmatpush3.bf16.msra.mxu0 %v1135_v9  ;;  %v1152_v26 = vld [vmem:[#allocation5 + $0xf0] sm:$0xff]   ;;  %v1156_v30 = vld [vmem:[#allocation5 + $0xf8] sm:$0xff]   ;;  %v61_v35 = vld [vmem:[#allocation2] sm:$0xff] }
  0x42   :  { %1010 = vmatprep.subr.bf16.mxu0 %v1138_v12  ;;  %v1153_v27 = vld [vmem:[#allocation5 + $0xb0] sm:$0xff]   ;;  %v68_v32 = vld [vmem:[#allocation2 + $0x38] sm:$0xff]  ;;  %v1158_v38 = vld [vmem:[#allocation5 + $0x140] sm:$0xff]  }
  0x43   :  { %1037 = vmatpush3.bf16.msra.mxu1 %v1137_v11  ;;  %v86_v33 = vpack.c.bf16 %v68_v32, %v62_v31  ;;  %v1157_v34 = vld [vmem:[#allocation5 + $0xb8] sm:$0xff]   ;;  %v67_v36 = vld [vmem:[#allocation2 + $0x30] sm:$0xff]  ;;  %v70_v40 = vld [vmem:[#allocation2 + $0x48] sm:$0xff] }
  0x44   :  { %1038 = vmatprep.subr.bf16.mxu1 %v1140_v14  ;;  %v85_v37 = vpack.c.bf16 %v67_v36, %v61_v35  ;;  %v64_v39 = vld [vmem:[#allocation2 + $0x18] sm:$0xff]  ;;  %v1159_v42 = vld [vmem:[#allocation5 + $0x100] sm:$0xff]   ;;  %v63_v43 = vld [vmem:[#allocation2 + $0x10] sm:$0xff] }
  0x45   :  { %1011 = vmatpush3.bf16.msra.mxu0 %v1139_v13  ;;  %517 = vmatprep.mubr.bf16.mxu0 %v86_v33  ;;  %v88_v41 = vpack.c.bf16 %v70_v40, %v64_v39  ;;  %v69_v44 = vld [vmem:[#allocation2 + $0x40] sm:$0xff]  ;;  %v1160_v46 = vld [vmem:[#allocation5 + $0x148] sm:$0xff]   ;;  %v1162_v48 = vld [vmem:[#allocation5 + $0x150] sm:$0xff]  }
  0x46   :  { %1012 = vmatprep.subr.bf16.mxu0 %v1142_v16  ;;  %v87_v45 = vpack.c.bf16 %v69_v44, %v63_v43  ;;  %v1161_v47 = vld [vmem:[#allocation5 + $0x108] sm:$0xff]   ;;  %v1163_v49 = vld [vmem:[#allocation5 + $0x110] sm:$0xff]   ;;  %v1164_v50 = vld [vmem:[#allocation5 + $0x158] sm:$0xff]  }
  0x47   :  { %1039 = vmatpush3.bf16.msra.mxu1 %v1141_v15  ;;  %566 = vmatprep.mubr.bf16.mxu1 %v88_v41  ;;  %v1165_v51 = vld [vmem:[#allocation5 + $0x118] sm:$0xff]   ;;  %v74_v52 = vld [vmem:[#allocation2 + $0x68] sm:$0xff]  ;;  %v1166_v54 = vld [vmem:[#allocation5 + $0x160] sm:$0xff]  }
  0x48   :  { %1040 = vmatprep.subr.bf16.mxu1 %v1144_v18  ;;  %v80_v53 = vld [vmem:[#allocation2 + $0x98] sm:$0xff]  ;;  %v73_v56 = vld [vmem:[#allocation2 + $0x60] sm:$0xff]  ;;  %v79_v57 = vld [vmem:[#allocation2 + $0x90] sm:$0xff] }
  0x49   :  { %1013 = vmatpush3.bf16.msra.mxu0 %v1143_v17  ;;  %v92_v55 = vpack.c.bf16 %v80_v53, %v74_v52  ;;  %v1167_v58 = vld [vmem:[#allocation5 + $0x120] sm:$0xff]   ;;  %v91_v59 = vpack.c.bf16 %v79_v57, %v73_v56  ;;  %v76_v60 = vld [vmem:[#allocation2 + $0x78] sm:$0xff]  ;;  %v82_v61 = vld [vmem:[#allocation2 + $0xa8] sm:$0xff] }
  0x4a   :  { %1014 = vmatprep.subr.bf16.mxu0 %v1146_v20  ;;  %v75_v62 = vld [vmem:[#allocation2 + $0x70] sm:$0xff]  ;;  %v94_v63 = vpack.c.bf16 %v82_v61, %v76_v60  ;;  %v81_v0 = vld [vmem:[#allocation2 + $0xa0] sm:$0xff]  ;;  %v1168_v1 = vld [vmem:[#allocation5 + $0x168] sm:$0xff]   ;;  %v193_v20 = vlaneseq }
  0x4b   :  { %1041 = vmatpush3.bf16.msra.mxu1 %v1145_v19  ;;  %v93_v2 = vpack.c.bf16 %v81_v0, %v75_v62  ;;  %v1169_v3 = vld [vmem:[#allocation5 + $0x128] sm:$0xff]   ;;  %v72_v5 = vld [vmem:[#allocation2 + $0x58] sm:$0xff]  ;;  %v1170_v6 = vld [vmem:[#allocation5 + $0x170] sm:$0xff]  }
  0x4c   :  { %1042 = vmatprep.subr.bf16.mxu1 %v1148_v22  ;;  %v66_v4 = vld [vmem:[#allocation2 + $0x28] sm:$0xff]  ;;  %v1171_v8 = vld [vmem:[#allocation5 + $0x130] sm:$0xff]   ;;  %v1172_v9 = vld [vmem:[#allocation5 + $0x178] sm:$0xff]  }
  0x4d   :  { %1015 = vmatpush3.bf16.msra.mxu0 %v1147_v21  ;;  %v90_v7 = vpack.c.bf16 %v72_v5, %v66_v4  ;;  %v1173_v10 = vld [vmem:[#allocation5 + $0x138] sm:$0xff]   ;;  %v65_v11 = vld [vmem:[#allocation2 + $0x20] sm:$0xff]  ;;  %v71_v12 = vld [vmem:[#allocation2 + $0x50] sm:$0xff]  ;;  %v1375_v21 = vshrl.u32 %v193_v20, 7 }
  0x4e   :  { %1016 = vmatprep.subr.bf16.mxu0 %v1150_v24  ;;  %v78_v13 = vld [vmem:[#allocation2 + $0x88] sm:$0xff]  ;;  %v84_v14 = vld [vmem:[#allocation2 + $0xb8] sm:$0xff]  ;;  %v89_v15 = vpack.c.bf16 %v71_v12, %v65_v11  ;;  %v77_v17 = vld [vmem:[#allocation2 + $0x80] sm:$0xff] }
  0x4f   :  { %1043 = vmatpush3.bf16.msra.mxu1 %v1149_v23  ;;  %v96_v16 = vpack.c.bf16 %v84_v14, %v78_v13  ;;  %v83_v18 = vld [vmem:[#allocation2 + $0xb0] sm:$0xff]  ;;  %v195_v22 = vsub.s32 0, %v1375_v21  ;;  %v1381_v23 = vld [vmem:[%s1417_s3] sm:$0xff]  ;;  %s1307_s3 = smov [#allocation8]  }
  0x50   :  { %1044 = vmatprep.subr.bf16.mxu1 %v1152_v26  ;;  %v95_v19 = vpack.c.bf16 %v83_v18, %v77_v17  ;;  %s916_s30 = sshll.u32 %s1307_s3, 4  ;;  %s917_s30 = int_to_ptr.vmem [resolvable:$true] %s916_s30 }
  0x51   :  { %1017 = vmatpush3.bf16.msra.mxu0 %v1151_v25  ;;  %v196_v25 = vrot.slane %v1381_v23, %v195_v22  ;;  %s1272_s5 = scalar_lea.vmem %s917_s30, 256  ;;  %p1277_p11 = scmp.lt.s32.totalorder %s917_s30, %s917_s30 }
  0x52   :  { %1018 = vmatprep.subr.bf16.mxu0 %v1154_v28  ;;  %p1273_p10 = scmp.ne.s32.totalorder %s917_s30, %s1272_s5  ;;  %p1278_p12 = scmp.lt.s32.totalorder %s1272_s5, %s1272_s5 }
  0x53   :  { %1045 = vmatpush3.bf16.msra.mxu1 %v1153_v27 }
  0x54   :  { %1046 = vmatprep.subr.bf16.mxu1 %v1156_v30  ;;  %p1279_p13 = por %p1278_p12, %p1277_p11 }
  0x55   :  { %1019 = vmatpush3.bf16.msra.mxu0 %v1155_v29 }
  0x56   :  { %1060 = vmatprep.subr.bf16.mxu0 %v1158_v38  ;;  %p1280_p0 = pnand %p1279_p13, %p1273_p10 }
  0x57   :  { %1047 = vmatpush3.bf16.msra.mxu1 %v1157_v34 }
  0x58   :  { %518 = vmatmul.mubr.bf16.vlgmr.msra.gmra.mrb[0].mxu0 %v85_v37 }
  0x59   :  { %1061 = vmatpush3.bf16.msra.mxu0 %v1159_v42  ;;  %525 = vmatprep.mubr.bf16.mxu0 %v92_v55 }
  0x5a   :  { %567 = vmatmul.mubr.bf16.vlgmr.msra.gmra.mrb[0].mxu1 %v87_v45  ;;  %1062 = vmatprep.subr.bf16.mxu0 %v1160_v46 }
  0x5b   :  { %574 = vmatprep.mubr.bf16.mxu1 %v94_v63 }
  0x5d   :  { %1063 = vmatpush3.bf16.msra.mxu0 %v1161_v47 }
  0x5e   :  { %1064 = vmatprep.subr.bf16.mxu0 %v1162_v48 }
  0x60   :  { %526 = vmatmul.mubr.bf16.gmra.mrb[4].mxu0 %v91_v59 }
  0x61   :  { %1065 = vmatpush3.bf16.msra.mxu0 %v1163_v49  ;;  %615 = vmatprep.mubr.bf16.mxu0 %v90_v7 }
  0x62   :  { %1066 = vmatprep.subr.bf16.mxu0 %v1164_v50  ;;  %575 = vmatmul.mubr.bf16.gmra.mrb[4].mxu1 %v93_v2 }
  0x65   :  { %1067 = vmatpush3.bf16.msra.mxu0 %v1165_v51 }
  0x66   :  { %1068 = vmatprep.subr.bf16.mxu0 %v1166_v54 }
  0x69   :  { %1069 = vmatpush3.bf16.msra.mxu0 %v1167_v58 }
  0x6a   :  { %1070 = vmatprep.subr.bf16.mxu0 %v1168_v1 }
  0x6d   :  { %1071 = vmatpush3.bf16.msra.mxu0 %v1169_v3 }
  0x6e   :  { %1072 = vmatprep.subr.bf16.mxu0 %v1170_v6 }
  0x71   :  { %1073 = vmatpush3.bf16.msra.mxu0 %v1171_v8 }
  0x72   :  { %1074 = vmatprep.subr.bf16.mxu0 %v1172_v9 }
  0x75   :  { %1075 = vmatpush3.bf16.msra.mxu0 %v1173_v10 }
  0x78   :  { %616 = vmatmul.mubr.bf16.vlgmr.msra.gmra.mrb[8].mxu0 %v89_v15 }
  0x79   :  { %623 = vmatprep.mubr.bf16.mxu0 %v96_v16 }
  0x80   :  { %624 = vmatmul.mubr.bf16.gmra.mrb[12].mxu0 %v95_v19 }
 0x12b   :  { %v1020_v24 = vpop.f32.mrb[0].mxu0 }
 0x12c   :  { %v1021_v26 = vpop.f32.mrb[1].mxu0 }
 0x12d   :  { %v1022_v27 = vadd.f32 %v1021_v26, %v1020_v24  ;;  %v1023_v28 = vpop.f32.mrb[2].mxu0  ;;  %v1048_v29 = vpop.f32.mrb[0].mxu1 }
 0x12e   :  { %v1024_v30 = vpop.f32.mrb[3].mxu0  ;;  %v1049_v33 = vpop.f32.mrb[1].mxu1 }
 0x12f   :  { %v520_v31 = vadd.f32 %v1022_v27, %v196_v25  ;;  %v1025_v32 = vadd.f32 %v1024_v30, %v1023_v28  ;;  %v1050_v34 = vadd.f32 %v1049_v33, %v1048_v29  ;;  %v1051_v35 = vpop.f32.mrb[2].mxu1  ;;  %v1174_v27 = vld [vmem:[#allocation7] sm:$0xff]   ;;  %v1175_v28 = vld [vmem:[#allocation7 + $0x8] sm:$0xff]   ;;  %v1176_v29 = vld [vmem:[#allocation7 + $0x10] sm:$0xff]  }
 0x130   :  { %v1052_v37 = vpop.f32.mrb[3].mxu1  ;;  %1098 = vmatprep.subr.bf16.mxu1 %v1174_v27  ;;  %v1177_v30 = vld [vmem:[#allocation7 + $0x18] sm:$0xff]   ;;  %v1180_v33 = vld [vmem:[#allocation7 + $0x30] sm:$0xff]  }
 0x131   :  { %v523_v36 = vadd.f32 %v1025_v32, %v196_v25  ;;  %v569_v38 = vadd.f32 %v1050_v34, %v520_v31  ;;  %v1053_v39 = vadd.f32 %v1052_v37, %v1051_v35  ;;  %1099 = vmatpush3.bf16.msra.mxu1 %v1174_v27  ;;  %v1178_v31 = vld [vmem:[#allocation7 + $0x20] sm:$0xff]   ;;  %v1179_v32 = vld [vmem:[#allocation7 + $0x28] sm:$0xff]   ;;  %v1181_v34 = vld [vmem:[#allocation7 + $0x38] sm:$0xff]   ;;  %v732_v27 = vsub.s32 3, %v1375_v21 }
 0x132   :  { %1100 = vmatprep.subr.bf16.mxu1 %v1175_v28 }
 0x133   :  { %v572_v40 = vadd.f32 %v1053_v39, %v523_v36  ;;  %v1026_v41 = vpop.f32.mrb[4].mxu0 }
 0x134   :  { %v1027_v42 = vpop.f32.mrb[5].mxu0 }
 0x135   :  { %v1028_v43 = vadd.f32 %v1027_v42, %v1026_v41  ;;  %v1029_v44 = vpop.f32.mrb[6].mxu0  ;;  %v1054_v45 = vpop.f32.mrb[4].mxu1  ;;  %1101 = vmatpush3.bf16.msra.mxu1 %v1175_v28  ;;  %v733_v28 = vrot.slane %v1381_v23, %v732_v27 }
 0x136   :  { %v1030_v46 = vpop.f32.mrb[7].mxu0  ;;  %v1055_v47 = vpop.f32.mrb[5].mxu1  ;;  %1102 = vmatprep.subr.bf16.mxu1 %v1176_v29 }
 0x137   :  { %v528_v48 = vadd.f32 %v1028_v43, %v196_v25  ;;  %v1031_v49 = vadd.f32 %v1030_v46, %v1029_v44  ;;  %v1056_v50 = vadd.f32 %v1055_v47, %v1054_v45  ;;  %v1057_v51 = vpop.f32.mrb[6].mxu1  ;;  %v678_v43 = vsub.s32 1, %v1375_v21 }
 0x138   :  { %v1058_v52 = vpop.f32.mrb[7].mxu1  ;;  %v686_v45 = vsub.s32 2, %v1375_v21 }
 0x139   :  { %v531_v53 = vadd.f32 %v1031_v49, %v196_v25  ;;  %v577_v54 = vadd.f32 %v1056_v50, %v528_v48  ;;  %v1059_v55 = vadd.f32 %v1058_v52, %v1057_v51  ;;  %1103 = vmatpush3.bf16.msra.mxu1 %v1176_v29  ;;  %v679_v48 = vrot.slane %v1381_v23, %v678_v43 }
 0x13a   :  { %1104 = vmatprep.subr.bf16.mxu1 %v1177_v30  ;;  %v687_v52 = vrot.slane %v1381_v23, %v686_v45 }
 0x13b   :  { %v580_v56 = vadd.f32 %v1059_v55, %v531_v53 }
 0x13d   :  { %1105 = vmatpush3.bf16.msra.mxu1 %v1177_v30 }
 0x13e   :  { %1106 = vmatprep.subr.bf16.mxu1 %v1178_v31 }
 0x141   :  { %1107 = vmatpush3.bf16.msra.mxu1 %v1178_v31 }
 0x142   :  { %1108 = vmatprep.subr.bf16.mxu1 %v1179_v32 }
 0x145   :  { %1109 = vmatpush3.bf16.msra.mxu1 %v1179_v32 }
 0x146   :  { %1110 = vmatprep.subr.bf16.mxu1 %v1180_v33 }
 0x149   :  { %1111 = vmatpush3.bf16.msra.mxu1 %v1180_v33 }
 0x14a   :  { %1112 = vmatprep.subr.bf16.mxu1 %v1181_v34 }
 0x14b   :  { %v1076_v57 = vpop.f32.mrb[8].mxu0 }
 0x14c   :  { %v1077_v58 = vpop.f32.mrb[9].mxu0 }
 0x14d   :  { %v1078_v59 = vadd.f32 %v1077_v58, %v1076_v57  ;;  %v1079_v60 = vpop.f32.mrb[10].mxu0  ;;  %1113 = vmatpush3.bf16.msra.mxu1 %v1181_v34 }
 0x14e   :  { %v1080_v61 = vpop.f32.mrb[11].mxu0 }
 0x14f   :  { %v1081_v62 = vadd.f32 %v1080_v61, %v1079_v60  ;;  %v618_v63 = vadd.f32 %v1078_v59, %v569_v38 }
 0x151   :  { %632 = vadd.xlane.f32.xlu0 %v618_v63  ;;  %v621_v0 = vadd.f32 %v1081_v62, %v572_v40 }
 0x153   :  { %v1082_v1 = vpop.f32.mrb[12].mxu0 }
 0x154   :  { %v1083_v2 = vpop.f32.mrb[13].mxu0 }
 0x155   :  { %v1084_v3 = vadd.f32 %v1083_v2, %v1082_v1  ;;  %v1085_v4 = vpop.f32.mrb[14].mxu0  ;;  %634 = vadd.xlane.f32.xlu0 %v621_v0 }
 0x156   :  { %v1086_v5 = vpop.f32.mrb[15].mxu0 }
 0x157   :  { %v1087_v6 = vadd.f32 %v1086_v5, %v1085_v4  ;;  %v626_v7 = vadd.f32 %v1084_v3, %v577_v54 }
 0x159   :  { %636 = vadd.xlane.f32.xlu1 %v626_v7  ;;  %v629_v8 = vadd.f32 %v1087_v6, %v580_v56 }
 0x15d   :  { %638 = vadd.xlane.f32.xlu1 %v629_v8 }
 0x1de   :  { %v633_v9 = vpop.xlane.xlu0 %632 }
 0x1df   :  { %v640_v10 = vmul.f32 0.0078125, %v633_v9 }
 0x1e1   :  { %v644_v11 = vsub.f32 %v618_v63, %v640_v10 }
 0x1e2   :  { %v635_v12 = vpop.xlane.xlu0 %634 }
 0x1e3   :  { %v641_v13 = vmul.f32 0.0078125, %v635_v12  ;;  %v648_v14 = vmul.f32 %v644_v11, %v644_v11 }
 0x1e5   :  { %v645_v15 = vsub.f32 %v621_v0, %v641_v13  ;;  %652 = vadd.xlane.f32.xlu0 %v648_v14 }
 0x1e6   :  { %v637_v16 = vpop.xlane.xlu1 %636 }
 0x1e7   :  { %v642_v17 = vmul.f32 0.0078125, %v637_v16  ;;  %v649_v18 = vmul.f32 %v645_v15, %v645_v15 }
 0x1e9   :  { %v646_v19 = vsub.f32 %v626_v7, %v642_v17  ;;  %654 = vadd.xlane.f32.xlu1 %v649_v18 }
 0x1ea   :  { %v639_v20 = vpop.xlane.xlu1 %638 }
 0x1eb   :  { %v643_v22 = vmul.f32 0.0078125, %v639_v20  ;;  %v650_v24 = vmul.f32 %v646_v19, %v646_v19 }
 0x1ed   :  { %v1384_v25 = vsub.f32 %v629_v8, %v643_v22  ;;  %656 = vadd.xlane.f32.xlu0 %v650_v24 }
 0x1ef   :  { %v651_v26 = vmul.f32 %v1384_v25, %v1384_v25 }
 0x1f1   :  { %658 = vadd.xlane.f32.xlu1 %v651_v26 }
 0x272   :  { %v653_v35 = vpop.xlane.xlu0 %652 }
 0x273   :  { %v660_v36 = vmul.f32 0.0078125, %v653_v35 }
 0x275   :  { %v664_v37 = vadd.f32 1e-05, %v660_v36 }
 0x276   :  { %v655_v38 = vpop.xlane.xlu1 %654 }
 0x277   :  { %1182 = vrsqrt.f32 %v664_v37  ;;  %v661_v39 = vmul.f32 0.0078125, %v655_v38 }
 0x279   :  { %v665_v40 = vadd.f32 1e-05, %v661_v39 }
 0x27a   :  { %v657_v41 = vpop.xlane.xlu0 %656 }
 0x27b   :  { %1184 = vrsqrt.f32 %v665_v40  ;;  %v662_v42 = vmul.f32 0.0078125, %v657_v41 }
 0x27d   :  { %v666_v44 = vadd.f32 1e-05, %v662_v42 }
 0x27e   :  { %v659_v46 = vpop.xlane.xlu1 %658 }
 0x27f   :  { %1186 = vrsqrt.f32 %v666_v44  ;;  %v663_v47 = vmul.f32 0.0078125, %v659_v46 }
 0x281   :  { %v1183_v49 = vpop.eup %1182  ;;  %v667_v50 = vadd.f32 1e-05, %v663_v47 }
 0x282   :  { %v672_v51 = vmul.f32 %v1183_v49, %v644_v11 }
 0x283   :  { %1188 = vrsqrt.f32 %v667_v50 }
 0x284   :  { %v680_v53 = vmul.f32 %v679_v48, %v672_v51 }
 0x285   :  { %v1185_v54 = vpop.eup %1184 }
 0x286   :  { %v673_v55 = vmul.f32 %v1185_v54, %v645_v15  ;;  %v688_v56 = vadd.f32 %v687_v52, %v680_v53 }
 0x288   :  { %v681_v57 = vmul.f32 %v679_v48, %v673_v55  ;;  %v696_v58 = vmul.f32 0.70710677, %v688_v56  ;;  %v692_v10 = vmul.f32 0.5, %v688_v56 }
 0x289   :  { %v1187_v59 = vpop.eup %1186 }
 0x28a   :  { %v674_v60 = vmul.f32 %v1187_v59, %v646_v19  ;;  %v689_v61 = vadd.f32 %v687_v52, %v681_v57  ;;  %1190 = verf.f32 %v696_v58 }
 0x28c   :  { %v682_v62 = vmul.f32 %v679_v48, %v674_v60  ;;  %v697_v63 = vmul.f32 0.70710677, %v689_v61  ;;  %v693_v11 = vmul.f32 0.5, %v689_v61 }
 0x28d   :  { %v1189_v0 = vpop.eup %1188 }
 0x28e   :  { %v690_v1 = vadd.f32 %v687_v52, %v682_v62  ;;  %v675_v2 = vmul.f32 %v1189_v0, %v1384_v25  ;;  %1192 = verf.f32 %v697_v63 }
 0x290   :  { %v698_v3 = vmul.f32 0.70710677, %v690_v1  ;;  %v683_v4 = vmul.f32 %v679_v48, %v675_v2  ;;  %v694_v19 = vmul.f32 0.5, %v690_v1  ;;  %v877_v1 = vsub.s32 4, %v1375_v21 }
 0x292   :  { %v691_v5 = vadd.f32 %v687_v52, %v683_v4  ;;  %1194 = verf.f32 %v698_v3  ;;  %v878_v2 = vrot.slane %v1381_v23, %v877_v1  ;;  %v885_v3 = vsub.s32 5, %v1375_v21 }
 0x294   :  { %v1191_v6 = vpop.eup %1190  ;;  %v699_v7 = vmul.f32 0.70710677, %v691_v5  ;;  %v695_v20 = vmul.f32 0.5, %v691_v5 }
 0x295   :  { %v704_v8 = vadd.f32 1.0, %v1191_v6 }
 0x296   :  { %1196 = verf.f32 %v699_v7 }
 0x297   :  { %v708_v13 = vmul.f32 %v704_v8, %v692_v10 }
 0x298   :  { %v1193_v9 = vpop.eup %1192 }
 0x299   :  { %v705_v12 = vadd.f32 1.0, %v1193_v9  ;;  %v886_v9 = vrot.slane %v1381_v23, %v885_v3 }
 0x29b   :  { %v709_v14 = vmul.f32 %v705_v12, %v693_v11 }
 0x29c   :  { %v1195_v15 = vpop.eup %1194 }
 0x29d   :  { %v712_v16 = vpack.c.bf16 %v709_v14, %v708_v13  ;;  %v706_v17 = vadd.f32 1.0, %v1195_v15 }
 0x29f   :  { %1114 = vmatprep.mubr.bf16.mxu1 %v712_v16  ;;  %v710_v24 = vmul.f32 %v706_v17, %v694_v19 }
 0x2a0   :  { %v1197_v18 = vpop.eup %1196 }
 0x2a1   :  { %v707_v22 = vadd.f32 1.0, %v1197_v18 }
 0x2a3   :  { %v711_v25 = vmul.f32 %v707_v22, %v695_v20 }
 0x2a5   :  { %v713_v26 = vpack.c.bf16 %v711_v25, %v710_v24 }
 0x2a7   :  { %1115 = vmatmul.mubr.bf16.vlgmr.msra.gmra.mrb[8].mxu1 %v713_v26 }
 0x37a   :  { %v1116_v29 = vpop.f32.mrb[8].mxu1 }
 0x37b   :  { %v816_v30 = vpop.f32.mrb[9].mxu1  ;;  %v825_v35 = vadd.f32 %v1116_v29, %v733_v28 }
 0x37c   :  { %v817_v31 = vadd.f32 %v816_v30, %v733_v28  ;;  %v1117_v32 = vpop.f32.mrb[10].mxu1 }
 0x37d   :  { %v819_v33 = vpop.f32.mrb[11].mxu1  ;;  %v828_v36 = vadd.f32 %v1117_v32, %v733_v28 }
 0x37e   :  { %v820_v34 = vadd.f32 %v819_v33, %v733_v28  ;;  %831 = vadd.xlane.f32.xlu0 %v817_v31 }
 0x380   :  { %833 = vadd.xlane.f32.xlu1 %v820_v34 }
 0x382   :  { %835 = vadd.xlane.f32.xlu0 %v825_v35 }
 0x384   :  { %837 = vadd.xlane.f32.xlu1 %v828_v36 }
 0x40b   :  { %v832_v37 = vpop.xlane.xlu0 %831 }
 0x40c   :  { %v839_v38 = vmul.f32 0.0078125, %v832_v37 }
 0x40d   :  { %v834_v39 = vpop.xlane.xlu1 %833 }
 0x40e   :  { %v843_v40 = vsub.f32 %v817_v31, %v839_v38  ;;  %v840_v41 = vmul.f32 0.0078125, %v834_v39 }
 0x40f   :  { %v836_v42 = vpop.xlane.xlu0 %835 }
 0x410   :  { %v844_v43 = vsub.f32 %v820_v34, %v840_v41  ;;  %v841_v44 = vmul.f32 0.0078125, %v836_v42  ;;  %v847_v45 = vmul.f32 %v843_v40, %v843_v40 }
 0x411   :  { %v838_v46 = vpop.xlane.xlu1 %837 }
 0x412   :  { %v845_v47 = vsub.f32 %v825_v35, %v841_v44  ;;  %v842_v48 = vmul.f32 0.0078125, %v838_v46  ;;  %851 = vadd.xlane.f32.xlu0 %v847_v45  ;;  %v848_v49 = vmul.f32 %v844_v43, %v844_v43 }
 0x414   :  { %v846_v50 = vsub.f32 %v828_v36, %v842_v48  ;;  %853 = vadd.xlane.f32.xlu1 %v848_v49  ;;  %v849_v51 = vmul.f32 %v845_v47, %v845_v47 }
 0x416   :  { %855 = vadd.xlane.f32.xlu0 %v849_v51  ;;  %v850_v52 = vmul.f32 %v846_v50, %v846_v50 }
 0x418   :  { %857 = vadd.xlane.f32.xlu1 %v850_v52 }
 0x49f   :  { %v852_v53 = vpop.xlane.xlu0 %851 }
 0x4a0   :  { %v859_v54 = vmul.f32 0.0078125, %v852_v53 }
 0x4a1   :  { %v854_v55 = vpop.xlane.xlu1 %853 }
 0x4a2   :  { %v863_v56 = vadd.f32 1e-05, %v859_v54  ;;  %v860_v57 = vmul.f32 0.0078125, %v854_v55 }
 0x4a3   :  { %v856_v58 = vpop.xlane.xlu0 %855 }
 0x4a4   :  { %1198 = vrsqrt.f32 %v863_v56  ;;  %v864_v59 = vadd.f32 1e-05, %v860_v57  ;;  %v861_v60 = vmul.f32 0.0078125, %v856_v58 }
 0x4a5   :  { %v858_v61 = vpop.xlane.xlu1 %857 }
 0x4a6   :  { %1200 = vrsqrt.f32 %v864_v59  ;;  %v865_v62 = vadd.f32 1e-05, %v861_v60  ;;  %v862_v63 = vmul.f32 0.0078125, %v858_v61 }
 0x4a8   :  { %1202 = vrsqrt.f32 %v865_v62  ;;  %v866_v0 = vadd.f32 1e-05, %v862_v63 }
 0x4aa   :  { %1204 = vrsqrt.f32 %v866_v0 }
 0x4ae   :  { %v1199_v4 = vpop.eup %1198 }
 0x4af   :  { %v871_v5 = vmul.f32 %v1199_v4, %v843_v40 }
 0x4b0   :  { %v1201_v6 = vpop.eup %1200 }
 0x4b1   :  { %v872_v7 = vmul.f32 %v1201_v6, %v844_v43  ;;  %v879_v8 = vmul.f32 %v878_v2, %v871_v5 }
 0x4b2   :  { %v1203_v10 = vpop.eup %1202 }
 0x4b3   :  { %v873_v11 = vmul.f32 %v1203_v10, %v845_v47  ;;  %v880_v12 = vmul.f32 %v878_v2, %v872_v7  ;;  %v887_v16 = vadd.f32 %v886_v9, %v879_v8 }
 0x4b4   :  { %v1205_v13 = vpop.eup %1204 }
 0x4b5   :  { %v874_v14 = vmul.f32 %v1205_v13, %v846_v50  ;;  %v881_v15 = vmul.f32 %v878_v2, %v873_v11  ;;  %v888_v17 = vadd.f32 %v886_v9, %v880_v12 }
 0x4b7   :  { %v882_v18 = vmul.f32 %v878_v2, %v874_v14  ;;  %v996_v19 = vpack.c.bf16 %v888_v17, %v887_v16  ;;  %v889_v21 = vadd.f32 %v886_v9, %v881_v15 }
 0x4b9   :  { %v890_v20 = vadd.f32 %v886_v9, %v882_v18  ;;  %997 = vst [vmem:[#allocation8] sm:$0xff] %v996_v19  }
 0x4bb   :  { %v1001_v22 = vpack.c.bf16 %v890_v20, %v889_v21 }
 0x4bd   :  { %1003 = vst [vmem:[#allocation8 + $0x8] sm:$0xff] %v1001_v22  }
 0x4be   :  { %1283 = shalt.err (!%p1280_p0)
}
 0x4bf   :  { %s1284_s8 = scalar_lea.hbm %s1418_s4, 256 }
 0x4c0   :  { %p1285_p1 = scmp.ne.s32.totalorder %s1418_s4, %s1284_s8  ;;  %p1288_p2 = scmp.lt.u32.totalorder %s1284_s8, %s1418_s4 }
 0x4c2   :  { %p1290_p3 = pnand %p1288_p2, %p1285_p1 }
 0x4c4   :  { %1293 = shalt.err (!%p1290_p3)
}
 0x4c5   :  { %922 = dma.vmem_to_hbm [thread:$0]  %s917_s30, 256, %s1418_s4, [#allocation4], %s1301_s25, %s1301_s25, %s1302_s26  }
 0x4c6   :  { %1298 = dma.done.wait [#allocation4], 256  }
 0x4c7   :  { %1299 = vsyncadd [#allocation4], 4294967040 }
 0x4c8   :  { %926 = vsyncpa [#allocation3], 1 }
 0x4c9   :  { %927 = vsyncpa [#allocation6], 1 }
 0x4ca   :  { %928 = vsyncpa [#allocation4], 1 }

</bundles_post_ra>
